<compile_context>
chip_gen: v6e
topology: v6e:2x2x1
jax: 0.10.0
libtpu: 0.0.40
codegen_flags: <defaults>
</compile_context>

<pallas_src>
import jax
import jax.numpy as jnp
from jax.experimental import pallas as pl
from jax.experimental.pallas import tpu as pltpu


def mlp_kernel(x_ref, w1_ref, b1_ref, w2_ref, b2_ref, w3_ref, b3_ref, o_ref):
    """One batch tile of fc3(relu(fc2(relu(fc1(x))))).

    x_ref:  [TILE_B, D]  f32 (cast to bf16 in-kernel)   w1_ref: [D, H1] bf16
    b1_ref: [1, H1] f32   w2_ref: [H1, H2] bf16          b2_ref: [1, H2] f32
    w3_ref: [1, H2] f32 (fc3 column laid out as a row)   b3_ref: [1, 1] f32 (SMEM)
    o_ref:  [TILE_B, 1]  f32
    """
    # fc1 + ReLU (bf16 operands on the MXU, f32 accumulate; dropout == identity)
    x = x_ref[...].astype(jnp.bfloat16)
    h1 = jnp.dot(x, w1_ref[...], preferred_element_type=jnp.float32)
    h1 = jnp.maximum(h1 + b1_ref[...], 0.0)
    # fc2 + ReLU
    h2 = jnp.dot(h1.astype(jnp.bfloat16), w2_ref[...],
                 preferred_element_type=jnp.float32)
    h2 = jnp.maximum(h2 + b2_ref[...], 0.0)
    # fc3 has a single output unit: skip the MXU, use VPU multiply + lane reduction.
    y = jnp.sum(h2 * w3_ref[...], axis=-1, keepdims=True) + b3_ref[0, 0]
    o_ref[...] = y.astype(o_ref.dtype)


def _round_up(v, m):
    return ((v + m - 1) // m) * m


def dnn_module_forward(x, params):
    """x: [B, 768 + 1 + one_hot_enc_len] float32. Returns [B] float32 (squeezed)."""
    w1, b1, w2, b2, w3, b3 = params
    B, D = x.shape
    H1 = w1.shape[1]
    H2 = w2.shape[1]

    # Weights are tiny (~25K params): bf16 MXU operands, f32 biases/epilogue.
    w1_bf = w1.astype(jnp.bfloat16)
    w2_bf = w2.astype(jnp.bfloat16)
    b1_f = jnp.reshape(b1, (1, H1)).astype(jnp.float32)
    b2_f = jnp.reshape(b2, (1, H2)).astype(jnp.float32)
    w3_row = jnp.reshape(w3, (1, H2)).astype(jnp.float32)  # fc3 column -> row
    b3_sc = jnp.reshape(b3, (1, 1)).astype(jnp.float32)

    # Batch tiling: big tiles to amortize per-step overhead, >=2 tiles when
    # possible so v7x's two TensorCores both get work. No wrapper-side padding:
    # the ragged last tile is masked by Pallas; padded rows are garbage but
    # independent and sliced off below.
    MAX_TILE_B = 1024  # 1024x776 f32 ~ 3.2 MiB/buffer; x2 buffers fits scoped VMEM everywhere
    if B <= 8:
        tile_b = 8
    elif B <= 2 * MAX_TILE_B:
        tile_b = min(MAX_TILE_B, _round_up(-(-B // 2), 8))  # split into ~2 tiles
    else:
        tile_b = MAX_TILE_B
    n_tiles = pl.cdiv(B, tile_b)

    const = lambda shape: pl.BlockSpec(shape, lambda i: (0, 0))  # grid-resident block

    # Advisory cost hint for XLA's scheduler (memory-bound custom call).
    flops = 2 * B * (D * H1 + H1 * H2 + H2)
    bytes_accessed = (B * D * x.dtype.itemsize            # stream x
                      + B * 4                             # output
                      + (D * H1 + H1 * H2) * 2            # bf16 weights
                      + (H1 + 2 * H2 + 1) * 4)            # biases + fc3 row
    cost = pl.CostEstimate(flops=flops, transcendentals=0,
                           bytes_accessed=bytes_accessed)

    out = pl.pallas_call(
        mlp_kernel,
        out_shape=jax.ShapeDtypeStruct((B, 1), jnp.float32),
        grid=(n_tiles,),
        in_specs=[
            pl.BlockSpec((tile_b, D), lambda i: (i, 0)),        # x batch tile
            const((D, H1)),                                     # w1 (resident)
            const((1, H1)),                                     # b1
            const((H1, H2)),                                    # w2
            const((1, H2)),                                     # b2
            const((1, H2)),                                     # w3 row
            pl.BlockSpec(memory_space=pltpu.MemorySpace.SMEM),  # b3 scalar
        ],
        out_specs=pl.BlockSpec((tile_b, 1), lambda i: (i, 0)),
        compiler_params=pltpu.CompilerParams(
            dimension_semantics=("parallel",)),
        cost_estimate=cost,
    )(x, w1_bf, b1_f, w2_bf, b2_f, w3_row, b3_sc)

    # Drop the trailing singleton dim (PyTorch's .squeeze()); any out-of-bounds
    # rows from the ragged last tile were never written into [0, B).
    return out[:B, 0]


def init_params(key, in_dim, layer_sizes):
    """Deterministic parameter init (matches nn.Linear shapes, transposed)."""
    k1, k2, k3, k4, k5, k6 = jax.random.split(key, 6)
    h1, h2 = layer_sizes
    s1 = 1.0 / jnp.sqrt(in_dim)
    s2 = 1.0 / jnp.sqrt(h1)
    s3 = 1.0 / jnp.sqrt(h2)
    w1 = jax.random.uniform(k1, (in_dim, h1), jnp.float32, -s1, s1)
    b1 = jax.random.uniform(k2, (1, h1), jnp.float32, -s1, s1)
    w2 = jax.random.uniform(k3, (h1, h2), jnp.float32, -s2, s2)
    b2 = jax.random.uniform(k4, (1, h2), jnp.float32, -s2, s2)
    w3 = jax.random.uniform(k5, (h2, 1), jnp.float32, -s3, s3)
    b3 = jax.random.uniform(k6, (1, 1), jnp.float32, -s3, s3)
    return (w1, b1, w2, b2, w3, b3)


if __name__ == "__main__":
    # Module config: one_hot_enc_len=7, n_hidden_layers=2, layer_sizes=[32, 16]
    one_hot_enc_len = 7
    layer_sizes = (32, 16)
    in_dim = 768 + 1 + one_hot_enc_len  # 776
    batch = 8

    key = jax.random.PRNGKey(0)
    kx, kp = jax.random.split(key)
    x = jax.random.normal(kx, (batch, in_dim), dtype=jnp.float32)
    params = init_params(kp, in_dim, layer_sizes)

    y = dnn_module_forward(x, params)
    jax.block_until_ready(y)

    # Cross-check against a pure-JAX f32 reference of the same forward pass.
    # Tolerance loosened because the kernel uses bf16 MXU operands (f32 accumulate).
    w1, b1, w2, b2, w3, b3 = params
    ref = jnp.maximum(x @ w1 + b1, 0.0)
    ref = jnp.maximum(ref @ w2 + b2, 0.0)
    ref = (ref @ w3 + b3)[:, 0]
    assert y.shape == (batch,)
    assert jnp.allclose(y, ref, atol=2e-2, rtol=2e-2), (y, ref)

    print("KERNEL_OK")
</pallas_src>

<mosaic_0001>
module attributes {stable_mosaic.version = 11 : i64} {
  func.func @mlp_kernel(%arg0: i32, %arg1: memref<8x776xf32, #tpu.memory_space<vmem>>, %arg2: memref<776x32xbf16, #tpu.memory_space<vmem>>, %arg3: memref<1x32xf32, #tpu.memory_space<vmem>>, %arg4: memref<32x16xbf16, #tpu.memory_space<vmem>>, %arg5: memref<1x16xf32, #tpu.memory_space<vmem>>, %arg6: memref<1x16xf32, #tpu.memory_space<vmem>>, %arg7: memref<1x1xf32, #tpu.memory_space<smem>>, %arg8: memref<8x1xf32, #tpu.memory_space<vmem>>) attributes {dimension_semantics = [#tpu.dimension_semantics<parallel>], iteration_bounds = array<i64: 1>, scalar_prefetch = 0 : i64, scratch_operands = 0 : i64, tpu.core_type = #tpu.core_type<tc>, window_params = [{transform_indices = @transform_0, window_bounds = array<i64: 8, 776>}, {pipeline_mode = #tpu.pipeline_mode<synchronous>, transform_indices = @transform_1, window_bounds = array<i64: 776, 32>}, {pipeline_mode = #tpu.pipeline_mode<synchronous>, transform_indices = @transform_2, window_bounds = array<i64: 1, 32>}, {pipeline_mode = #tpu.pipeline_mode<synchronous>, transform_indices = @transform_3, window_bounds = array<i64: 32, 16>}, {pipeline_mode = #tpu.pipeline_mode<synchronous>, transform_indices = @transform_4, window_bounds = array<i64: 1, 16>}, {pipeline_mode = #tpu.pipeline_mode<synchronous>, transform_indices = @transform_5, window_bounds = array<i64: 1, 16>}, {transform_indices = @transform_6, window_bounds = array<i64: 1, 1>}, {transform_indices = @transform_7, window_bounds = array<i64: 8, 1>}]} {
    %c0 = arith.constant 0 : index
    %c0_0 = arith.constant 0 : index
    %0 = vector.load %arg1[%c0, %c0_0] : memref<8x776xf32, #tpu.memory_space<vmem>>, vector<8x776xf32>
    %1 = arith.truncf %0 : vector<8x776xf32> to vector<8x776xbf16>
    %c0_1 = arith.constant 0 : index
    %c0_2 = arith.constant 0 : index
    %2 = vector.load %arg2[%c0_1, %c0_2] : memref<776x32xbf16, #tpu.memory_space<vmem>>, vector<776x32xbf16>
    %cst = arith.constant dense<0.000000e+00> : vector<8x32xf32>
    %3 = tpu.matmul %1, %2, %cst {dimension_numbers = #tpu.dot_dimension_numbers<[1], [0], [0], [1], [0, 0, 1, 1], [], []>} : vector<8x776xbf16>, vector<776x32xbf16>, vector<8x32xf32> -> vector<8x32xf32>
    %c0_3 = arith.constant 0 : index
    %c0_4 = arith.constant 0 : index
    %4 = vector.load %arg3[%c0_3, %c0_4] : memref<1x32xf32, #tpu.memory_space<vmem>>, vector<1x32xf32>
    %5 = vector.broadcast %4 : vector<1x32xf32> to vector<8x32xf32>
    %6 = arith.addf %3, %5 : vector<8x32xf32>
    %cst_5 = arith.constant 0.000000e+00 : f32
    %7 = vector.broadcast %cst_5 : f32 to vector<8x32xf32>
    %8 = arith.maximumf %6, %7 : vector<8x32xf32>
    %9 = arith.truncf %8 : vector<8x32xf32> to vector<8x32xbf16>
    %c0_6 = arith.constant 0 : index
    %c0_7 = arith.constant 0 : index
    %10 = vector.load %arg4[%c0_6, %c0_7] : memref<32x16xbf16, #tpu.memory_space<vmem>>, vector<32x16xbf16>
    %cst_8 = arith.constant dense<0.000000e+00> : vector<8x16xf32>
    %11 = tpu.matmul %9, %10, %cst_8 {dimension_numbers = #tpu.dot_dimension_numbers<[1], [0], [0], [1], [0, 0, 1, 1], [], []>} : vector<8x32xbf16>, vector<32x16xbf16>, vector<8x16xf32> -> vector<8x16xf32>
    %c0_9 = arith.constant 0 : index
    %c0_10 = arith.constant 0 : index
    %12 = vector.load %arg5[%c0_9, %c0_10] : memref<1x16xf32, #tpu.memory_space<vmem>>, vector<1x16xf32>
    %13 = vector.broadcast %12 : vector<1x16xf32> to vector<8x16xf32>
    %14 = arith.addf %11, %13 : vector<8x16xf32>
    %cst_11 = arith.constant 0.000000e+00 : f32
    %15 = vector.broadcast %cst_11 : f32 to vector<8x16xf32>
    %16 = arith.maximumf %14, %15 : vector<8x16xf32>
    %c0_12 = arith.constant 0 : index
    %c0_13 = arith.constant 0 : index
    %17 = vector.load %arg6[%c0_12, %c0_13] : memref<1x16xf32, #tpu.memory_space<vmem>>, vector<1x16xf32>
    %18 = vector.broadcast %17 : vector<1x16xf32> to vector<8x16xf32>
    %19 = arith.mulf %16, %18 : vector<8x16xf32>
    %cst_14 = arith.constant dense<0.000000e+00> : vector<8xf32>
    %20 = vector.multi_reduction <add>, %19, %cst_14 [1] : vector<8x16xf32> to vector<8xf32>
    %21 = vector.shape_cast %20 : vector<8xf32> to vector<8x1xf32>
    %c0_15 = arith.constant 0 : index
    %c0_16 = arith.constant 0 : index
    %22 = memref.load %arg7[%c0_15, %c0_16] : memref<1x1xf32, #tpu.memory_space<smem>>
    %23 = vector.broadcast %22 : f32 to vector<8x1xf32>
    %24 = arith.addf %21, %23 : vector<8x1xf32>
    %c0_17 = arith.constant 0 : index
    %c0_18 = arith.constant 0 : index
    %25 = vector.load %arg8[%c0_17, %c0_18] : memref<8x1xf32, #tpu.memory_space<vmem>>, vector<8x1xf32>
    tpu.vector_store %arg8[%c0_17, %c0_18], %24 {strides = array<i32>} : memref<8x1xf32, #tpu.memory_space<vmem>>, vector<8x1xf32>,
    return
  }
  func.func @transform_0(%arg0: i32) -> (i32, i32) {
    %c0_i32 = arith.constant 0 : i32
    %c0_i32_0 = arith.constant 0 : i32
    return %arg0, %c0_i32 : i32, i32
  }
  func.func @transform_1(%arg0: i32) -> (i32, i32) {
    %c0_i32 = arith.constant 0 : i32
    %c0_i32_0 = arith.constant 0 : i32
    %c0_i32_1 = arith.constant 0 : i32
    return %c0_i32, %c0_i32_0 : i32, i32
  }
  func.func @transform_2(%arg0: i32) -> (i32, i32) {
    %c0_i32 = arith.constant 0 : i32
    %c0_i32_0 = arith.constant 0 : i32
    %c0_i32_1 = arith.constant 0 : i32
    return %c0_i32, %c0_i32_0 : i32, i32
  }
  func.func @transform_3(%arg0: i32) -> (i32, i32) {
    %c0_i32 = arith.constant 0 : i32
    %c0_i32_0 = arith.constant 0 : i32
    %c0_i32_1 = arith.constant 0 : i32
    return %c0_i32, %c0_i32_0 : i32, i32
  }
  func.func @transform_4(%arg0: i32) -> (i32, i32) {
    %c0_i32 = arith.constant 0 : i32
    %c0_i32_0 = arith.constant 0 : i32
    %c0_i32_1 = arith.constant 0 : i32
    return %c0_i32, %c0_i32_0 : i32, i32
  }
  func.func @transform_5(%arg0: i32) -> (i32, i32) {
    %c0_i32 = arith.constant 0 : i32
    %c0_i32_0 = arith.constant 0 : i32
    %c0_i32_1 = arith.constant 0 : i32
    return %c0_i32, %c0_i32_0 : i32, i32
  }
  func.func @transform_6(%arg0: i32) -> (i32, i32) {
    %c0_i32 = arith.constant 0 : i32
    %c0_i32_0 = arith.constant 0 : i32
    %c0_i32_1 = arith.constant 0 : i32
    return %c0_i32, %c0_i32_0 : i32, i32
  }
  func.func @transform_7(%arg0: i32) -> (i32, i32) {
    %c0_i32 = arith.constant 0 : i32
    %c0_i32_0 = arith.constant 0 : i32
    return %arg0, %c0_i32 : i32, i32
  }
}

</mosaic_0001>

<bundles_post_ra>
// kernel: tpu_custom_call.1
= control target key start
LH: loop header
LB: loop body
LE: loop exit
PB: predicated region body
PF: predicated region fallthrough
CT: control target
= control target key end

     0   :  { %v890_v44 = vmov 0.0   ;;  %vm891_vm0 = vmmov 0   ;;  %vm441_vm1 = vcmask 1043456   ;;  %vm437_vm2 = vcmask 64512   ;;  %s1123_s1 = inlined_call_operand.vmem [shape: bf16[776,32], index: 1, kind: input, shape index: {}]   ;;  %s1124_s0 = inlined_call_operand.vmem [shape: f32[8,776], index: 0, kind: input, shape index: {}]   ;;  %s1125_s3 = inlined_call_operand.vmem [shape: bf16[32,16], index: 3, kind: input, shape index: {}]   ;;  %s1126_s2 = inlined_call_operand.vmem [shape: f32[1,32], index: 2, kind: input, shape index: {}]   ;;  %s1127_s4 = inlined_call_operand.vmem [shape: f32[1,16], index: 4, kind: input, shape index: {}]   ;;  %s1128_s5 = inlined_call_operand.vmem [shape: f32[1,16], index: 5, kind: input, shape index: {}]   ;;  %s1129_s6 = inlined_call_operand.<no memory space> [shape: f32[1,1], index: 6, kind: input, shape index: {}]   ;;  %s1130_s7 = inlined_call_operand.vmem [shape: f32[8,1], index: 7, kind: output, shape index: {}]  }
   0x1   :  { %v839_v0 = vld [vmem:[%s1123_s1 + $0x78] sm:$0xff]   ;;  %v843_v4 = vld [vmem:[%s1123_s1 + $0x70] sm:$0xff]   ;;  %v847_v8 = vld [vmem:[%s1123_s1 + $0x68] sm:$0xff]   ;;  %vm630_vm3 = vcmask 261120   ;;  %vm683_vm4 = vcmask 130048   ;;  %vm690_vm5 = vcmask 7168  }
   0x2   :  { %v840_v1 = vld [vmem:[%s1123_s1 + $0x38] sm:$0xff]   ;;  %752 = vmatprep.subr.bf16.mxu0 %v839_v0  ;;  %v844_v5 = vld [vmem:[%s1123_s1 + $0x30] sm:$0xff]   ;;  %v848_v9 = vld [vmem:[%s1123_s1 + $0x28] sm:$0xff]  }
   0x3   :  { %v841_v2 = vld [vmem:[%s1123_s1 + $0xf8] sm:$0xff]   ;;  %753 = vmatpush3.bf16.msra.mxu0 %v840_v1  ;;  %v845_v6 = vld [vmem:[%s1123_s1 + $0xf0] sm:$0xff]   ;;  %v849_v10 = vld [vmem:[%s1123_s1 + $0xe8] sm:$0xff]  }
   0x4   :  { %v842_v3 = vld [vmem:[%s1123_s1 + $0xb8] sm:$0xff]   ;;  %774 = vmatprep.subr.bf16.mxu1 %v841_v2  ;;  %754 = vmatprep.subr.bf16.mxu0 %v843_v4  ;;  %v846_v7 = vld [vmem:[%s1123_s1 + $0xb0] sm:$0xff]   ;;  %v850_v11 = vld [vmem:[%s1123_s1 + $0xa8] sm:$0xff]  }
   0x5   :  { %775 = vmatpush3.bf16.msra.mxu1 %v842_v3  ;;  %v851_v12 = vld [vmem:[%s1123_s1 + $0x60] sm:$0xff]   ;;  %v855_v16 = vld [vmem:[%s1123_s1 + $0x58] sm:$0xff]   ;;  %v859_v20 = vld [vmem:[%s1123_s1 + $0x50] sm:$0xff]  }
   0x6   :  { %776 = vmatprep.subr.bf16.mxu1 %v845_v6  ;;  %v852_v13 = vld [vmem:[%s1123_s1 + $0x20] sm:$0xff]   ;;  %v856_v17 = vld [vmem:[%s1123_s1 + $0x18] sm:$0xff]   ;;  %v860_v21 = vld [vmem:[%s1123_s1 + $0x10] sm:$0xff]  }
   0x7   :  { %755 = vmatpush3.bf16.msra.mxu0 %v844_v5  ;;  %v853_v14 = vld [vmem:[%s1123_s1 + $0xe0] sm:$0xff]   ;;  %v857_v18 = vld [vmem:[%s1123_s1 + $0xd8] sm:$0xff]   ;;  %v861_v22 = vld [vmem:[%s1123_s1 + $0xd0] sm:$0xff]  }
   0x8   :  { %756 = vmatprep.subr.bf16.mxu0 %v847_v8  ;;  %v854_v15 = vld [vmem:[%s1123_s1 + $0xa0] sm:$0xff]   ;;  %v858_v19 = vld [vmem:[%s1123_s1 + $0x98] sm:$0xff]   ;;  %v862_v23 = vld [vmem:[%s1123_s1 + $0x90] sm:$0xff]  }
   0x9   :  { %777 = vmatpush3.bf16.msra.mxu1 %v846_v7  ;;  %v863_v24 = vld [vmem:[%s1123_s1 + $0x48] sm:$0xff]   ;;  %v867_v28 = vld [vmem:[%s1123_s1 + $0x40] sm:$0xff]   ;;  %v871_v36 = vld [vmem:[%s1123_s1 + $0x178] sm:$0xff]  }
   0xa   :  { %778 = vmatprep.subr.bf16.mxu1 %v849_v10  ;;  %v864_v25 = vld [vmem:[%s1123_s1 + $0x8] sm:$0xff]   ;;  %v868_v29 = vld [vmem:[%s1123_s1] sm:$0xff]   ;;  %v31_v37 = vld [vmem:[%s1124_s0 + $0x18] sm:$0xff] }
   0xb   :  { %757 = vmatpush3.bf16.msra.mxu0 %v848_v9  ;;  %v865_v26 = vld [vmem:[%s1123_s1 + $0xc8] sm:$0xff]   ;;  %v869_v30 = vld [vmem:[%s1123_s1 + $0xc0] sm:$0xff]   ;;  %v38_v38 = vpack.c.bf16 %v31_v37, %v31_v37  ;;  %v872_v39 = vld [vmem:[%s1123_s1 + $0x138] sm:$0xff]  }
   0xc   :  { %758 = vmatprep.subr.bf16.mxu0 %v851_v12  ;;  %v866_v27 = vld [vmem:[%s1123_s1 + $0x88] sm:$0xff]   ;;  %v870_v33 = vld [vmem:[%s1123_s1 + $0x80] sm:$0xff]   ;;  %v30_v40 = vld [vmem:[%s1124_s0 + $0x10] sm:$0xff] }
   0xd   :  { %779 = vmatpush3.bf16.msra.mxu1 %v850_v11  ;;  %v29_v31 = vld [vmem:[%s1124_s0 + $0x8] sm:$0xff]  ;;  %v28_v34 = vld [vmem:[%s1124_s0] sm:$0xff]  ;;  %517 = vmatprep.mubr.bf16.mxu1 %v38_v38  ;;  %v37_v41 = vpack.c.bf16 %v30_v40, %v30_v40  ;;  %v873_v42 = vld [vmem:[%s1123_s1 + $0x170] sm:$0xff]  }
   0xe   :  { %780 = vmatprep.subr.bf16.mxu1 %v853_v14  ;;  %v36_v32 = vpack.c.bf16 %v29_v31, %v29_v31  ;;  %v35_v35 = vpack.c.bf16 %v28_v34, %v28_v34  ;;  %v874_v43 = vld [vmem:[%s1123_s1 + $0x130] sm:$0xff]   ;;  %v875_v45 = vld [vmem:[%s1123_s1 + $0x168] sm:$0xff]   ;;  %v877_v47 = vld [vmem:[%s1123_s1 + $0x160] sm:$0xff]  }
   0xf   :  { %759 = vmatpush3.bf16.msra.mxu0 %v852_v13  ;;  %v876_v46 = vld [vmem:[%s1123_s1 + $0x128] sm:$0xff]   ;;  %v878_v48 = vld [vmem:[%s1123_s1 + $0x120] sm:$0xff]   ;;  %v879_v49 = vld [vmem:[%s1123_s1 + $0x158] sm:$0xff]  }
  0x10   :  { %760 = vmatprep.subr.bf16.mxu0 %v855_v16  ;;  %477 = vmatprep.mubr.bf16.mxu0 %v36_v32  ;;  %v880_v50 = vld [vmem:[%s1123_s1 + $0x118] sm:$0xff]   ;;  %v881_v51 = vld [vmem:[%s1123_s1 + $0x150] sm:$0xff]   ;;  %v887_v52 = vld [vmem:[%s1123_s1 + $0x180] ss:$0 sps:$4 sm:$0xff]  }
  0x11   :  { %781 = vmatpush3.bf16.msra.mxu1 %v854_v15  ;;  %v33_v53 = vld [vmem:[%s1124_s0 + $0x28] sm:$0xff]  ;;  %v34_v54 = vld [vmem:[%s1124_s0 + $0x30] sm:$0xff]  ;;  %v443_v55 = vsel %vm441_vm1, %v887_v52, 0  ;;  %v885_v61 = vld [vmem:[%s1123_s1 + $0x140] sm:$0xff]  }
  0x12   :  { %782 = vmatprep.subr.bf16.mxu1 %v857_v18  ;;  %v40_v56 = vpack.c.bf16 %v33_v53, %v33_v53  ;;  %v41_v57 = vpack.c.bf16 %v34_v54, %v34_v54  ;;  %v882_v58 = vld [vmem:[%s1123_s1 + $0x110] sm:$0xff]   ;;  %v883_v59 = vld [vmem:[%s1123_s1 + $0x148] sm:$0xff]   ;;  %v886_v62 = vld [vmem:[%s1123_s1 + $0x100] sm:$0xff]  }
  0x13   :  { %761 = vmatpush3.bf16.msra.mxu0 %v856_v17  ;;  %v884_v60 = vld [vmem:[%s1123_s1 + $0x108] sm:$0xff]   ;;  %v32_v63 = vld [vmem:[%s1124_s0 + $0x20] sm:$0xff] }
  0x14   :  { %762 = vmatprep.subr.bf16.mxu0 %v859_v20  ;;  %v39_v0 = vpack.c.bf16 %v32_v63, %v32_v63  ;;  %v888_v1 = vld [vmem:[%s1125_s3 + $0x8] sm:$0xff]   ;;  %v889_v2 = vld [vmem:[%s1125_s3] sm:$0xff]  }
  0x15   :  { %783 = vmatpush3.bf16.msra.mxu1 %v858_v19  ;;  %v696_v16 = vld [vmem:[%s1126_s2] ss:$0 sm:$0xff] }
  0x16   :  { %784 = vmatprep.subr.bf16.mxu1 %v861_v22 }
  0x17   :  { %763 = vmatpush3.bf16.msra.mxu0 %v860_v21 }
  0x18   :  { %764 = vmatprep.subr.bf16.mxu0 %v863_v24 }
  0x19   :  { %785 = vmatpush3.bf16.msra.mxu1 %v862_v23 }
  0x1a   :  { %786 = vmatprep.subr.bf16.mxu1 %v865_v26 }
  0x1b   :  { %765 = vmatpush3.bf16.msra.mxu0 %v864_v25 }
  0x1c   :  { %766 = vmatprep.subr.bf16.mxu0 %v867_v28 }
  0x1d   :  { %787 = vmatpush3.bf16.msra.mxu1 %v866_v27 }
  0x1e   :  { %788 = vmatprep.subr.bf16.mxu1 %v869_v30 }
  0x1f   :  { %767 = vmatpush3.bf16.msra.mxu0 %v868_v29  ;;  %v747_v29 = vld [vmem:[%s1127_s4] ss:$0 sm:$0xff] }
  0x20   :  { %796 = vmatprep.subr.bf16.mxu0 %v871_v36 }
  0x21   :  { %789 = vmatpush3.bf16.msra.mxu1 %v870_v33  ;;  %v751_v33 = vld [vmem:[%s1128_s5] ss:$0 sm:$0xff] }
  0x22   :  { %478 = vmatmul.mubr.bf16.vlgmr.msra.gmra.mxu0 %v35_v35  ;;  %823 = vmatprep.subr.bf16.mxu1 %v890_v44 }
  0x23   :  { %797 = vmatpush3.bf16.msra.mxu0 %v872_v39  ;;  %557 = vmatprep.mubr.bf16.mxu0 %v40_v56  ;;  %v688_v39 = vstv %s1129_s6 }
  0x24   :  { %518 = vmatmul.mubr.bf16.vlgmr.msra.gmra.mxu1 %v37_v41  ;;  %798 = vmatprep.subr.bf16.mxu0 %v873_v42 }
  0x25   :  { %825 = vmatprep.mubr.msk.bf16.mxu1 %vm891_vm0, %v890_v44  ;;  %824 = vmatpush3.bf16.msra.mxu1 %v443_v55 }
  0x26   :  { %829 = vmatprep.subr.bf16.mxu1 %v890_v44 }
  0x27   :  { %799 = vmatpush3.bf16.msra.mxu0 %v874_v43 }
  0x28   :  { %800 = vmatprep.subr.bf16.mxu0 %v875_v45 }
  0x2b   :  { %801 = vmatpush3.bf16.msra.mxu0 %v876_v46 }
  0x2c   :  { %802 = vmatprep.subr.bf16.mxu0 %v877_v47  ;;  %826 = vmatmul.mubr.msk.bf16.vlgmr.msra.gmra.mxu1 %vm437_vm2, %v41_v57 }
  0x2d   :  { %833 = vmatprep.mubr.msk.bf16.mxu1 %vm891_vm0, %v890_v44  ;;  %830 = vmatpush3.bf16.msra.mxu1 %v888_v1 }
  0x2e   :  { %831 = vmatprep.subr.bf16.mxu1 %v890_v44 }
  0x2f   :  { %803 = vmatpush3.bf16.msra.mxu0 %v878_v48 }
  0x30   :  { %804 = vmatprep.subr.bf16.mxu0 %v879_v49 }
  0x31   :  { %832 = vmatpush3.bf16.msra.mxu1 %v889_v2 }
  0x33   :  { %805 = vmatpush3.bf16.msra.mxu0 %v880_v50 }
  0x34   :  { %806 = vmatprep.subr.bf16.mxu0 %v881_v51 }
  0x37   :  { %807 = vmatpush3.bf16.msra.mxu0 %v882_v58 }
  0x38   :  { %808 = vmatprep.subr.bf16.mxu0 %v883_v59 }
  0x3b   :  { %809 = vmatpush3.bf16.msra.mxu0 %v884_v60 }
  0x3c   :  { %810 = vmatprep.subr.bf16.mxu0 %v885_v61 }
  0x3f   :  { %811 = vmatpush3.bf16.msra.mxu0 %v886_v62 }
  0x42   :  { %558 = vmatmul.mubr.bf16.vlgmr.msra.gmra.mxu0 %v39_v0 }
  0xe2   :  { %v768_v3 = vpop.f32.mrf.mxu0 }
  0xe4   :  { %v769_v4 = vpop.f32.mrf.mxu0  ;;  %v790_v5 = vpop.f32.mrf.mxu1 }
  0xe5   :  { %v770_v15 = vadd.f32 %v769_v4, %v768_v3 }
  0xe6   :  { %v771_v6 = vpop.f32.mrf.mxu0  ;;  %v791_v7 = vpop.f32.mrf.mxu1 }
  0xe7   :  { %v480_v17 = vadd.f32 %v770_v15, %v696_v16  ;;  %v792_v18 = vadd.f32 %v791_v7, %v790_v5 }
  0xe8   :  { %v772_v8 = vpop.f32.mrf.mxu0  ;;  %v793_v9 = vpop.f32.mrf.mxu1 }
  0xe9   :  { %v520_v21 = vadd.f32 %v792_v18, %v480_v17 }
  0xea   :  { %v794_v10 = vpop.f32.mrf.mxu1 }
  0xec   :  { %v599_v11 = vpop.f32.mrf.mxu1 }
  0xee   :  { %v827_v12 = vpop.f32.mrf.mxu1 }
  0xf0   :  { %v602_v13 = vpop.f32.mrf.mxu1 }
  0xf2   :  { %v828_v14 = vpop.f32.mrf.mxu1 }
 0x102   :  { %v812_v19 = vpop.f32.mrf.mxu0 }
 0x104   :  { %v813_v20 = vpop.f32.mrf.mxu0 }
 0x105   :  { %v814_v22 = vadd.f32 %v813_v20, %v812_v19 }
 0x106   :  { %v815_v23 = vpop.f32.mrf.mxu0 }
 0x107   :  { %v560_v24 = vadd.f32 %v814_v22, %v520_v21 }
 0x108   :  { %v816_v25 = vpop.f32.mrf.mxu0 }
 0x109   :  { %v600_v26 = vadd.f32 %v599_v11, %v560_v24 }
 0x10b   :  { %v605_v27 = vmax.f32 %v600_v26, 0.0 }
 0x10d   :  { %v606_v28 = vpack.c.bf16 %v605_v27, %v605_v27 }
 0x10f   :  { %834 = vmatmul.mubr.msk.bf16.vlgmr.msra.gmra.mxu1 %vm630_vm3, %v606_v28 }
 0x1cf   :  { %v668_v30 = vpop.f32.mrf.mxu1 }
 0x1d0   :  { %v669_v31 = vadd.f32 %v747_v29, %v668_v30 }
 0x1d1   :  { %v835_v32 = vpop.f32.mrf.mxu1 }
 0x1d2   :  { %v674_v34 = vmax.f32 %v669_v31, 0.0 }
 0x1d3   :  { %v671_v35 = vpop.f32.mrf.mxu1 }
 0x1d4   :  { %v682_v36 = vmul.f32 %v751_v33, %v674_v34 }
 0x1d5   :  { %v836_v37 = vpop.f32.mrf.mxu1 }
 0x1d6   :  { %v684_v38 = vsel %vm683_vm4, %v682_v36, 0.0 }
 0x1d7   :  { %685 = vadd.xlane.f32.xlu0 %v684_v38 }
 0x260   :  { %v686_v40 = vpop.xlane.xlu0 %685 }
 0x261   :  { %v689_v41 = vadd.f32 %v688_v39, %v686_v40 }
 0x263   :  { %691 = vst.msk [vmem:[%s1130_s7] sm:$0xff] %vm690_vm5, %v689_v41 }

</bundles_post_ra>
